<compile_context>
chip_gen: v7x
topology: tpu7x:2x2x1
jax: 0.10.0
libtpu: 0.0.40
codegen_flags: <defaults>
</compile_context>

<pallas_src>
import functools

import jax
import jax.numpy as jnp
import numpy as np
from jax.experimental import pallas as pl
from jax.experimental.pallas import tpu as pltpu


_LANE = 128                         # lane width (last dim)
_SUBLANE = 8                        # sublane granularity (second-to-last dim)
_VMEM_BUDGET = 20 * 1024 * 1024     # per-tile working-set target (fits v7x's smaller VMEM)
_VMEM_LIMIT = 32 * 1024 * 1024      # explicit scoped-VMEM limit (safe on v5e/v6e/v7x)


def _round_up(x, m):
    return ((x + m - 1) // m) * m


def _pick_time_tile(cin_p, cout_p, in_bytes, out_bytes, halo, k):
    """Largest time tile whose (double-buffered) working set fits the VMEM budget."""
    for t_t in (2048, 1024, 512, 256, 128, 64, 32, 16, 8):
        est = (2 * (t_t + halo) * cin_p * in_bytes                      # x main + halo blocks (x2 buffers)
               + 2 * t_t * cout_p * out_bytes                           # output block (x2 buffers)
               + (t_t + halo) * cout_p * 4                              # f32 window scratch
               + 2 * (cin_p * cout_p * in_bytes + (k + 2) * cout_p * 4))  # weights / biases
        if est <= _VMEM_BUDGET:
            return t_t
    return 8


def _bsconv1d_kernel(x_ref, xh_ref, wp_ref, bp_ref, wd_ref, bd_ref, o_ref, ybuf_ref,
                     *, t_tile, halo, K, pad, T):
    # x_ref:    (1, t_tile, Cin_p)        compute dtype (this tile of zero-padded x)
    # xh_ref:   (1, halo,  Cin_p)         compute dtype (first rows of the next tile)
    # wp_ref:   (Cin_p, Cout_p)           compute dtype (pointwise weight, transposed)
    # bp_ref:   (1, Cout_p)               f32
    # wd_ref:   (K, Cout_p)               f32           (depthwise weight, transposed)
    # bd_ref:   (1, Cout_p)               f32
    # o_ref:    (1, t_tile, Cout_p)
    # ybuf_ref: (t_tile + halo, Cout_p)   f32 scratch (extended pointwise output window)
    t = pl.program_id(1)
    base = t * t_tile                      # first zero-padded-x row of this tile

    # ---- pointwise conv (kernel_size=1): MXU matmuls, f32 accumulation ----
    y_main = jnp.dot(x_ref[0], wp_ref[...], preferred_element_type=jnp.float32)
    y_halo = jnp.dot(xh_ref[0], wp_ref[...], preferred_element_type=jnp.float32)

    # The pointwise bias applies only to rows that come from real input; rows that are
    # depthwise-conv zero padding (or tile padding) must stay exactly zero.
    bp = bp_ref[...]
    rm = jax.lax.broadcasted_iota(jnp.int32, (t_tile, 1), 0) + base
    rh = jax.lax.broadcasted_iota(jnp.int32, (halo, 1), 0) + (base + t_tile)
    y_main = y_main + jnp.where((rm >= pad) & (rm < pad + T), 1.0, 0.0) * bp
    y_halo = y_halo + jnp.where((rh >= pad) & (rh < pad + T), 1.0, 0.0) * bp

    # ---- assemble the extended window: two 8-aligned, full-lane-width stores ----
    ybuf_ref[pl.ds(0, t_tile), :] = y_main
    ybuf_ref[pl.ds(t_tile, halo), :] = y_halo

    # ---- depthwise conv: K shifted multiply-adds on the VPU ----
    wd = wd_ref[...]                                           # hoisted: single weight load
    acc = jnp.broadcast_to(bd_ref[...], (t_tile, bp.shape[-1])).astype(jnp.float32)
    for k in range(K):                                         # small static K -> unrolled
        acc = acc + wd[k:k + 1, :] * ybuf_ref[pl.ds(k, t_tile), :]

    o_ref[0] = acc.astype(o_ref.dtype)


def conv_transposed(x, wp, bp, wd, bd, *, kernel_size, padding,
                    compute_dtype=jnp.bfloat16, tile_t=None):
    """ConvTransposed forward. x: (B, T, C_in) channels-last -> (B, T_out, C_out)."""
    B, T, Cin = x.shape
    Cout = wp.shape[0]
    K = kernel_size
    T_out = T + 2 * padding - (K - 1)
    if T_out <= 0:
        raise ValueError("non-positive output length")

    cin_p = _round_up(Cin, _LANE)              # lane-dense channel padding
    cout_p = _round_up(Cout, _LANE)
    halo = _round_up(max(K - 1, 1), _SUBLANE)  # sublane-aligned halo depth

    in_bytes = jnp.dtype(compute_dtype).itemsize
    out_bytes = jnp.dtype(x.dtype).itemsize
    if tile_t is None:
        tile_t = _pick_time_tile(cin_p, cout_p, in_bytes, out_bytes, halo, K)
    t_tile = min(_round_up(tile_t, halo), _round_up(T_out, halo))
    n_t = -(-T_out // t_tile)
    t_pad_total = n_t * t_tile + halo          # padded time length of x

    # Wrapper-side layout: zero-pad time (conv padding + tile remainder + halo) and
    # channels (to multiples of 128); cast the matmul operands to the compute dtype.
    x_pad = jnp.pad(x, ((0, 0),
                        (padding, t_pad_total - padding - T),
                        (0, cin_p - Cin))).astype(compute_dtype)
    wp_k = jnp.zeros((cin_p, cout_p), compute_dtype).at[:Cin, :Cout].set(
        jnp.transpose(wp[:, :, 0], (1, 0)).astype(compute_dtype))
    bp_k = jnp.zeros((1, cout_p), jnp.float32).at[:, :Cout].set(bp.astype(jnp.float32))
    wd_k = jnp.zeros((K, cout_p), jnp.float32).at[:, :Cout].set(
        jnp.transpose(wd[:, 0, :], (1, 0)).astype(jnp.float32))
    bd_k = jnp.zeros((1, cout_p), jnp.float32).at[:, :Cout].set(bd.astype(jnp.float32))

    kernel = functools.partial(_bsconv1d_kernel, t_tile=t_tile, halo=halo,
                               K=K, pad=padding, T=T)
    ratio = t_tile // halo                     # halo block stride (in halo-sized blocks)

    out_padded = pl.pallas_call(
        kernel,
        out_shape=jax.ShapeDtypeStruct((B, n_t * t_tile, cout_p), x.dtype),
        grid_spec=pltpu.PrefetchScalarGridSpec(
            num_scalar_prefetch=0,
            grid=(B, n_t),
            in_specs=[
                pl.BlockSpec((1, t_tile, cin_p), lambda b, t: (b, t, 0)),
                pl.BlockSpec((1, halo, cin_p), lambda b, t: (b, (t + 1) * ratio, 0)),
                pl.BlockSpec((cin_p, cout_p), lambda b, t: (0, 0)),
                pl.BlockSpec((1, cout_p), lambda b, t: (0, 0)),
                pl.BlockSpec((K, cout_p), lambda b, t: (0, 0)),
                pl.BlockSpec((1, cout_p), lambda b, t: (0, 0)),
            ],
            out_specs=pl.BlockSpec((1, t_tile, cout_p), lambda b, t: (b, t, 0)),
            scratch_shapes=[pltpu.VMEM((t_tile + halo, cout_p), jnp.float32)],
        ),
        compiler_params=pltpu.CompilerParams(
            dimension_semantics=("parallel", "parallel"),
            vmem_limit_bytes=_VMEM_LIMIT),
    )(x_pad, x_pad, wp_k, bp_k, wd_k, bd_k)

    return out_padded[:, :T_out, :Cout]


def conv_transposed_ref(x, wp, bp, wd, bd, *, kernel_size, padding):
    """Pure-JAX (f32) reference matching the PyTorch forward."""
    B, T, Cin = x.shape
    Cout = wp.shape[0]
    K = kernel_size
    y = jnp.einsum("btc,oc->bto", x, wp[:, :, 0]) + bp[None, None, :]
    y_pad = jnp.pad(y, ((0, 0), (padding, padding), (0, 0)))
    T_out = T + 2 * padding - (K - 1)
    z = jnp.zeros((B, T_out, Cout), jnp.float32) + bd[None, None, :]
    for k in range(K):
        z = z + y_pad[:, k:k + T_out, :] * wd[:, 0, k][None, None, :]
    return z.astype(x.dtype)


if __name__ == "__main__":
    def _run_case(case_key, *, B, T, Cin, Cout, K, pad, tile_t, compute_dtype, rtol, atol):
        kx, k1, k2, k3, k4 = jax.random.split(case_key, 5)
        x = jax.random.normal(kx, (B, T, Cin), dtype=jnp.float32)
        wp = jax.random.normal(k1, (Cout, Cin, 1), dtype=jnp.float32) * 0.1   # pointwise.weight
        bp = jax.random.normal(k2, (Cout,), dtype=jnp.float32) * 0.1          # pointwise.bias
        wd = jax.random.normal(k3, (Cout, 1, K), dtype=jnp.float32) * 0.1     # depthwise.weight
        bd = jax.random.normal(k4, (Cout,), dtype=jnp.float32) * 0.1          # depthwise.bias
        out = conv_transposed(x, wp, bp, wd, bd, kernel_size=K, padding=pad,
                              compute_dtype=compute_dtype, tile_t=tile_t)
        out = jax.block_until_ready(out)
        ref = conv_transposed_ref(x, wp, bp, wd, bd, kernel_size=K, padding=pad)
        np.testing.assert_allclose(np.asarray(out), np.asarray(ref), rtol=rtol, atol=atol)

    key = jax.random.PRNGKey(0)
    k1, k2, k3 = jax.random.split(key, 3)

    # 1) small "same-length" BSConv (f32 MXU path, single time tile) — original demo shapes.
    _run_case(k1, B=2, T=16, Cin=32, Cout=32, K=5, pad=2,
              tile_t=None, compute_dtype=jnp.float32, rtol=1e-5, atol=1e-5)
    # 2) multi-tile with halo, Cin != Cout, bf16 MXU path (f32 accumulation).
    _run_case(k2, B=2, T=200, Cin=32, Cout=64, K=5, pad=2,
              tile_t=64, compute_dtype=jnp.bfloat16, rtol=2e-2, atol=2e-2)
    # 3) module defaults (kernel_size=1, padding=0), multi-tile.
    _run_case(k3, B=2, T=40, Cin=32, Cout=32, K=1, pad=0,
              tile_t=16, compute_dtype=jnp.float32, rtol=1e-5, atol=1e-5)

    print("KERNEL_OK")
</pallas_src>

<mosaic_0001>
module attributes {stable_mosaic.version = 11 : i64} {
  func.func @_bsconv1d_kernel(%arg0: i32, %arg1: i32, %arg2: memref<1x16x128xf32, #tpu.memory_space<vmem>>, %arg3: memref<1x8x128xf32, #tpu.memory_space<vmem>>, %arg4: memref<128x128xf32, #tpu.memory_space<vmem>>, %arg5: memref<1x128xf32, #tpu.memory_space<vmem>>, %arg6: memref<5x128xf32, #tpu.memory_space<vmem>>, %arg7: memref<1x128xf32, #tpu.memory_space<vmem>>, %arg8: memref<1x16x128xf32, #tpu.memory_space<vmem>>, %arg9: memref<24x128xf32, #tpu.memory_space<vmem>>) attributes {dimension_semantics = [#tpu.dimension_semantics<parallel>, #tpu.dimension_semantics<parallel>], iteration_bounds = array<i64: 2, 1>, scalar_prefetch = 0 : i64, scratch_operands = 1 : i64, tpu.core_type = #tpu.core_type<tc>, window_params = [{transform_indices = @transform_0, window_bounds = array<i64: 1, 16, 128>}, {transform_indices = @transform_1, window_bounds = array<i64: 1, 8, 128>}, {pipeline_mode = #tpu.pipeline_mode<synchronous>, transform_indices = @transform_2, window_bounds = array<i64: 128, 128>}, {pipeline_mode = #tpu.pipeline_mode<synchronous>, transform_indices = @transform_3, window_bounds = array<i64: 1, 128>}, {pipeline_mode = #tpu.pipeline_mode<synchronous>, transform_indices = @transform_4, window_bounds = array<i64: 5, 128>}, {pipeline_mode = #tpu.pipeline_mode<synchronous>, transform_indices = @transform_5, window_bounds = array<i64: 1, 128>}, {transform_indices = @transform_6, window_bounds = array<i64: 1, 16, 128>}]} {
    %c16_i32 = arith.constant 16 : i32
    %0 = arith.muli %arg1, %c16_i32 : i32
    %c0 = arith.constant 0 : index
    %c0_0 = arith.constant 0 : index
    %c0_1 = arith.constant 0 : index
    %1 = vector.load %arg2[%c0, %c0_0, %c0_1] : memref<1x16x128xf32, #tpu.memory_space<vmem>>, vector<1x16x128xf32>
    %2 = vector.shape_cast %1 : vector<1x16x128xf32> to vector<16x128xf32>
    %c0_2 = arith.constant 0 : index
    %c0_3 = arith.constant 0 : index
    %3 = vector.load %arg4[%c0_2, %c0_3] : memref<128x128xf32, #tpu.memory_space<vmem>>, vector<128x128xf32>
    %cst = arith.constant dense<0.000000e+00> : vector<16x128xf32>
    %4 = tpu.matmul %2, %3, %cst {dimension_numbers = #tpu.dot_dimension_numbers<[1], [0], [0], [1], [0, 0, 1, 1], [], []>} : vector<16x128xf32>, vector<128x128xf32>, vector<16x128xf32> -> vector<16x128xf32>
    %c0_4 = arith.constant 0 : index
    %c0_5 = arith.constant 0 : index
    %c0_6 = arith.constant 0 : index
    %5 = vector.load %arg3[%c0_4, %c0_5, %c0_6] : memref<1x8x128xf32, #tpu.memory_space<vmem>>, vector<1x8x128xf32>
    %6 = vector.shape_cast %5 : vector<1x8x128xf32> to vector<8x128xf32>
    %c0_7 = arith.constant 0 : index
    %c0_8 = arith.constant 0 : index
    %7 = vector.load %arg4[%c0_7, %c0_8] : memref<128x128xf32, #tpu.memory_space<vmem>>, vector<128x128xf32>
    %cst_9 = arith.constant dense<0.000000e+00> : vector<8x128xf32>
    %8 = tpu.matmul %6, %7, %cst_9 {dimension_numbers = #tpu.dot_dimension_numbers<[1], [0], [0], [1], [0, 0, 1, 1], [], []>} : vector<8x128xf32>, vector<128x128xf32>, vector<8x128xf32> -> vector<8x128xf32>
    %c0_10 = arith.constant 0 : index
    %c0_11 = arith.constant 0 : index
    %9 = vector.load %arg5[%c0_10, %c0_11] : memref<1x128xf32, #tpu.memory_space<vmem>>, vector<1x128xf32>
    %10 = tpu.iota {dimensions = array<i32: 0>} : vector<16x1xi32>
    %11 = vector.broadcast %0 : i32 to vector<16x1xi32>
    %12 = arith.addi %10, %11 : vector<16x1xi32>
    %13 = tpu.iota {dimensions = array<i32: 0>} : vector<8x1xi32>
    %c16_i32_12 = arith.constant 16 : i32
    %14 = arith.addi %0, %c16_i32_12 : i32
    %15 = vector.broadcast %14 : i32 to vector<8x1xi32>
    %16 = arith.addi %13, %15 : vector<8x1xi32>
    %c2_i32 = arith.constant 2 : i32
    %17 = vector.broadcast %c2_i32 : i32 to vector<16x1xi32>
    %18 = arith.cmpi sge, %12, %17 : vector<16x1xi32>
    %c18_i32 = arith.constant 18 : i32
    %19 = vector.broadcast %c18_i32 : i32 to vector<16x1xi32>
    %20 = arith.cmpi slt, %12, %19 : vector<16x1xi32>
    %21 = arith.andi %18, %20 : vector<16x1xi1>
    %cst_13 = arith.constant 1.000000e+00 : f32
    %cst_14 = arith.constant 0.000000e+00 : f32
    %22 = vector.broadcast %cst_13 : f32 to vector<16x1xf32>
    %23 = vector.broadcast %cst_14 : f32 to vector<16x1xf32>
    %24 = arith.select %21, %22, %23 : vector<16x1xi1>, vector<16x1xf32>
    %25 = vector.broadcast %24 : vector<16x1xf32> to vector<16x128xf32>
    %26 = vector.broadcast %9 : vector<1x128xf32> to vector<16x128xf32>
    %27 = arith.mulf %25, %26 : vector<16x128xf32>
    %28 = arith.addf %4, %27 : vector<16x128xf32>
    %c2_i32_15 = arith.constant 2 : i32
    %29 = vector.broadcast %c2_i32_15 : i32 to vector<8x1xi32>
    %30 = arith.cmpi sge, %16, %29 : vector<8x1xi32>
    %c18_i32_16 = arith.constant 18 : i32
    %31 = vector.broadcast %c18_i32_16 : i32 to vector<8x1xi32>
    %32 = arith.cmpi slt, %16, %31 : vector<8x1xi32>
    %33 = arith.andi %30, %32 : vector<8x1xi1>
    %cst_17 = arith.constant 1.000000e+00 : f32
    %cst_18 = arith.constant 0.000000e+00 : f32
    %34 = vector.broadcast %cst_17 : f32 to vector<8x1xf32>
    %35 = vector.broadcast %cst_18 : f32 to vector<8x1xf32>
    %36 = arith.select %33, %34, %35 : vector<8x1xi1>, vector<8x1xf32>
    %37 = vector.broadcast %36 : vector<8x1xf32> to vector<8x128xf32>
    %38 = vector.broadcast %9 : vector<1x128xf32> to vector<8x128xf32>
    %39 = arith.mulf %37, %38 : vector<8x128xf32>
    %40 = arith.addf %8, %39 : vector<8x128xf32>
    %c0_19 = arith.constant 0 : index
    %c0_20 = arith.constant 0 : index
    %41 = vector.load %arg9[%c0_19, %c0_20] : memref<24x128xf32, #tpu.memory_space<vmem>>, vector<16x128xf32>
    tpu.vector_store %arg9[%c0_19, %c0_20], %28 {strides = array<i32>} : memref<24x128xf32, #tpu.memory_space<vmem>>, vector<16x128xf32>,
    %c16 = arith.constant 16 : index
    %c0_21 = arith.constant 0 : index
    %42 = vector.load %arg9[%c16, %c0_21] : memref<24x128xf32, #tpu.memory_space<vmem>>, vector<8x128xf32>
    tpu.vector_store %arg9[%c16, %c0_21], %40 {strides = array<i32>} : memref<24x128xf32, #tpu.memory_space<vmem>>, vector<8x128xf32>,
    %c0_22 = arith.constant 0 : index
    %c0_23 = arith.constant 0 : index
    %43 = vector.load %arg6[%c0_22, %c0_23] : memref<5x128xf32, #tpu.memory_space<vmem>>, vector<5x128xf32>
    %c0_24 = arith.constant 0 : index
    %c0_25 = arith.constant 0 : index
    %44 = vector.load %arg7[%c0_24, %c0_25] : memref<1x128xf32, #tpu.memory_space<vmem>>, vector<1x128xf32>
    %45 = vector.shape_cast %44 : vector<1x128xf32> to vector<1x128xf32>
    %46 = vector.broadcast %45 : vector<1x128xf32> to vector<16x128xf32>
    %47 = vector.extract_strided_slice %43 {offsets = [0, 0], sizes = [1, 128], strides = [1, 1]} : vector<5x128xf32> to vector<1x128xf32>
    %c0_26 = arith.constant 0 : index
    %c0_27 = arith.constant 0 : index
    %48 = vector.load %arg9[%c0_26, %c0_27] : memref<24x128xf32, #tpu.memory_space<vmem>>, vector<16x128xf32>
    %49 = vector.broadcast %47 : vector<1x128xf32> to vector<16x128xf32>
    %50 = arith.mulf %49, %48 : vector<16x128xf32>
    %51 = arith.addf %46, %50 : vector<16x128xf32>
    %52 = vector.extract_strided_slice %43 {offsets = [1, 0], sizes = [1, 128], strides = [1, 1]} : vector<5x128xf32> to vector<1x128xf32>
    %c1 = arith.constant 1 : index
    %c0_28 = arith.constant 0 : index
    %53 = vector.load %arg9[%c1, %c0_28] : memref<24x128xf32, #tpu.memory_space<vmem>>, vector<16x128xf32>
    %54 = vector.broadcast %52 : vector<1x128xf32> to vector<16x128xf32>
    %55 = arith.mulf %54, %53 : vector<16x128xf32>
    %56 = arith.addf %51, %55 : vector<16x128xf32>
    %57 = vector.extract_strided_slice %43 {offsets = [2, 0], sizes = [1, 128], strides = [1, 1]} : vector<5x128xf32> to vector<1x128xf32>
    %c2 = arith.constant 2 : index
    %c0_29 = arith.constant 0 : index
    %58 = vector.load %arg9[%c2, %c0_29] : memref<24x128xf32, #tpu.memory_space<vmem>>, vector<16x128xf32>
    %59 = vector.broadcast %57 : vector<1x128xf32> to vector<16x128xf32>
    %60 = arith.mulf %59, %58 : vector<16x128xf32>
    %61 = arith.addf %56, %60 : vector<16x128xf32>
    %62 = vector.extract_strided_slice %43 {offsets = [3, 0], sizes = [1, 128], strides = [1, 1]} : vector<5x128xf32> to vector<1x128xf32>
    %c3 = arith.constant 3 : index
    %c0_30 = arith.constant 0 : index
    %63 = vector.load %arg9[%c3, %c0_30] : memref<24x128xf32, #tpu.memory_space<vmem>>, vector<16x128xf32>
    %64 = vector.broadcast %62 : vector<1x128xf32> to vector<16x128xf32>
    %65 = arith.mulf %64, %63 : vector<16x128xf32>
    %66 = arith.addf %61, %65 : vector<16x128xf32>
    %67 = vector.extract_strided_slice %43 {offsets = [4, 0], sizes = [1, 128], strides = [1, 1]} : vector<5x128xf32> to vector<1x128xf32>
    %c4 = arith.constant 4 : index
    %c0_31 = arith.constant 0 : index
    %68 = vector.load %arg9[%c4, %c0_31] : memref<24x128xf32, #tpu.memory_space<vmem>>, vector<16x128xf32>
    %69 = vector.broadcast %67 : vector<1x128xf32> to vector<16x128xf32>
    %70 = arith.mulf %69, %68 : vector<16x128xf32>
    %71 = arith.addf %66, %70 : vector<16x128xf32>
    %c0_32 = arith.constant 0 : index
    %c0_33 = arith.constant 0 : index
    %c0_34 = arith.constant 0 : index
    %72 = vector.load %arg8[%c0_32, %c0_33, %c0_34] : memref<1x16x128xf32, #tpu.memory_space<vmem>>, vector<1x16x128xf32>
    %73 = vector.shape_cast %72 : vector<1x16x128xf32> to vector<16x128xf32>
    %74 = vector.shape_cast %71 : vector<16x128xf32> to vector<1x16x128xf32>
    tpu.vector_store %arg8[%c0_32, %c0_33, %c0_34], %74 {strides = array<i32>} : memref<1x16x128xf32, #tpu.memory_space<vmem>>, vector<1x16x128xf32>,
    return
  }
  func.func @transform_0(%arg0: i32, %arg1: i32) -> (i32, i32, i32) {
    %c0_i32 = arith.constant 0 : i32
    %c0_i32_0 = arith.constant 0 : i32
    return %arg0, %arg1, %c0_i32 : i32, i32, i32
  }
  func.func @transform_1(%arg0: i32, %arg1: i32) -> (i32, i32, i32) {
    %c1_i32 = arith.constant 1 : i32
    %0 = arith.addi %arg1, %c1_i32 : i32
    %c2_i32 = arith.constant 2 : i32
    %1 = arith.muli %0, %c2_i32 : i32
    %c0_i32 = arith.constant 0 : i32
    %c0_i32_0 = arith.constant 0 : i32
    return %arg0, %1, %c0_i32 : i32, i32, i32
  }
  func.func @transform_2(%arg0: i32, %arg1: i32) -> (i32, i32) {
    %c0_i32 = arith.constant 0 : i32
    %c0_i32_0 = arith.constant 0 : i32
    %c0_i32_1 = arith.constant 0 : i32
    return %c0_i32, %c0_i32_0 : i32, i32
  }
  func.func @transform_3(%arg0: i32, %arg1: i32) -> (i32, i32) {
    %c0_i32 = arith.constant 0 : i32
    %c0_i32_0 = arith.constant 0 : i32
    %c0_i32_1 = arith.constant 0 : i32
    return %c0_i32, %c0_i32_0 : i32, i32
  }
  func.func @transform_4(%arg0: i32, %arg1: i32) -> (i32, i32) {
    %c0_i32 = arith.constant 0 : i32
    %c0_i32_0 = arith.constant 0 : i32
    %c0_i32_1 = arith.constant 0 : i32
    return %c0_i32, %c0_i32_0 : i32, i32
  }
  func.func @transform_5(%arg0: i32, %arg1: i32) -> (i32, i32) {
    %c0_i32 = arith.constant 0 : i32
    %c0_i32_0 = arith.constant 0 : i32
    %c0_i32_1 = arith.constant 0 : i32
    return %c0_i32, %c0_i32_0 : i32, i32
  }
  func.func @transform_6(%arg0: i32, %arg1: i32) -> (i32, i32, i32) {
    %c0_i32 = arith.constant 0 : i32
    %c0_i32_0 = arith.constant 0 : i32
    return %arg0, %arg1, %c0_i32 : i32, i32, i32
  }
}

</mosaic_0001>

<bundles_post_ra>
// kernel: tpu_custom_call.1
= control target key start
LH: loop header
LB: loop body
LE: loop exit
PB: predicated region body
PF: predicated region fallthrough
CT: control target
= control target key end

     0   :  { %s1535_s0 = inlined_call_operand.hbm [shape: f32[2,24,128], index: 0, kind: input, shape index: {}]   ;;  %s1536_s1 = inlined_call_operand.hbm [shape: f32[2,24,128], index: 1, kind: input, shape index: {}]   ;;  %s1537_s2 = inlined_call_operand.hbm [shape: f32[128,128], index: 2, kind: input, shape index: {}]   ;;  %s1538_s3 = inlined_call_operand.vmem [shape: f32[1,128], index: 3, kind: input, shape index: {}]   ;;  %s1539_s4 = inlined_call_operand.vmem [shape: f32[5,128], index: 4, kind: input, shape index: {}]   ;;  %s1540_s5 = inlined_call_operand.vmem [shape: f32[1,128], index: 5, kind: input, shape index: {}]   ;;  %s1541_s6 = inlined_call_operand.hbm [shape: f32[2,16,128], index: 6, kind: output, shape index: {}]  }
   0x1   :  { %1553 = sst [smem:[#allocation19_spill]] %s1535_s0 }
   0x2   :  { %1554 = sst [smem:[#allocation20_spill]] %s1537_s2 }
   0x3   :  { %11 = vsyncpa [#allocation4], 0 }
   0x4   :  { %13 = vsyncpa [#allocation4 + $0x1], 0 }
   0x5   :  { %14 = vsyncpa [#allocation7], 0 }
   0x6   :  { %16 = vsyncpa [#allocation7 + $0x1], 0 }
   0x7   :  { %17 = vsyncpa [#allocation5], 0 }
   0x8   :  { %19 = vsyncpa [#allocation5 + $0x1], 0  ;;  %s1257_s21 = smov 0   ;;  %s1259_s22 = smov 0  }
   0x9   :  { %s1261_s23 = smov 0   ;;  %s1263_s24 = smov 0  }
   0xa   :  { %s1265_s25 = smov 0   ;;  %s1267_s26 = smov 0  }
   0xb LB: > { %1555 = sst [smem:[#allocation14_spill]] %s1189_s21  ;;  %s1288_s27 = sadd.s32 4294967295, %s1209_s26   ;;  %s1209_s26 = sphi %s1267_s26, %s25_s26   ;;  %s1205_s25 = sphi %s1265_s25, %s1589_s25   ;;  %s1201_s24 = sphi %s1263_s24, %s1588_s24   ;;  %s1197_s23 = sphi %s1261_s23, %s1587_s23   ;;  %s1193_s22 = sphi %s1259_s22, %s1586_s22   ;;  %s1189_s21 = sphi %s1257_s21, %s1585_s21  }
   0xc   : > { %1556 = sst [smem:[#allocation15_spill]] %s1197_s23  ;;  %s762_s28 = sadd.s32 4294967294, %s1209_s26  }
   0xd   : > { %p59_p0 = scmp.ne.s32.totalorder %s1193_s22, %s1189_s21  ;;  %p1542_p1 = scmp.eq.s32.totalorder %s1288_s27, 0 }
   0xe   : > { %p207_p3 = scmp.eq.s32.totalorder %s762_s28, 1  ;;  %p763_p5 = scmp.ge.s32.totalorder %s1209_s26, 1 }
   0xf   : > { %p1297_p4 = por %p1542_p1, %p59_p0  ;;  %p214_p7 = scmp.lt.s32.totalorder %s1209_s26, 3 }
  0x10   : > { %p1302_p6 = por %p207_p3, %p59_p0  ;;  %s1211_s8 = smov [#allocation8]  }
  0x11   : > { %s1557_s29 = scalar_select %p1297_p4, 1, 0 }
  0x12   : > { %s1558_s30 = scalar_select %p1302_p6, 1, 0 }
  0x13   : > { %p1307_p8 = pnand %p763_p5, %p214_p7  ;;  %s226_s9 = sshll.u32 %s1211_s8, 4  ;;  %s227_s9 = int_to_ptr.vmem [resolvable:$true] %s226_s9 }
  0x14   : > { %1559 = sst [smem:[#allocation16_spill]] %s1558_s30  ;;  %s37_s11 = sadd.s32 1, %s1205_s25 }
  0x15   : > { %s1560_s7 = scalar_select %p1307_p8, 1, 0 }
  0x16   : > { %p955_p9 = pneg %p1307_p8  ;;  %s1562_s2 = sld [smem:[#allocation20_spill]] }
  0x18   : > { %p1316_p11 = pnand %p955_p9, %p1542_p1 }
  0x1a   : > { %p1032_p13 = pneg %p1316_p11 }
  0x1c   : > { %s1030_s14 = scalar_lea.hbm %s1562_s2, 2048 }
  0x1d   : > { %p1031_p12 = scmp.ne.s32.totalorder %s1562_s2, %s1030_s14  ;;  %p1037_p5 = scmp.lt.u32.totalorder %s1030_s14, %s1562_s2 }
  0x1f   : > { %p1033_p0 = pnand %p1032_p13, %p1031_p12 }
  0x21   : > { %p1034_p3 = pneg %p1033_p0 }
  0x23   : > { %p1039_p7 = pnand %p1037_p5, %p1034_p3 }
  0x25   : > { %1042 = shalt.err (!%p1039_p7)
}
  0x26   : > { %s1043_s19 = scalar_lea.vmem %s227_s9, 2048  ;;  %p1051_p2 = scmp.lt.s32.totalorder %s227_s9, %s227_s9 }
  0x27   : > { %p1044_p9 = scmp.ne.s32.totalorder %s227_s9, %s1043_s19  ;;  %p1052_p6 = scmp.lt.s32.totalorder %s1043_s19, %s1043_s19 }
  0x29   : > { %p1046_p10 = pnand %p1044_p9, %p1032_p13  ;;  %p1053_p4 = por %p1052_p6, %p1051_p2 }
  0x2b   : > { %p1047_p1 = pneg %p1046_p10 }
  0x2d   : > { %p1054_p8 = pnand %p1053_p4, %p1047_p1 }
  0x2f   : > { %1057 = shalt.err (!%p1054_p8)
}
  0x30   : > { %s1545_s20 = smov 128   ;;  %s1547_s28 = smov 8  }
  0x31   : > { %958 = dma.hbm_to_vmem [thread:$0]  (!%p1316_p11), %s1562_s2, 2048, %s227_s9, [#allocation7], %s1545_s20, %s1545_s20, %s1547_s28  }
  0x32   : > { %p39_p1 = scmp.ge.s32.totalorder %s37_s11, 2  ;;  %s46_s13 = sadd.s32 1, %s1197_s23 }
  0x33   : > { %p53_p2 = scmp.ne.s32.totalorder %s1197_s23, %s1193_s22  ;;  %p54_p4 = scmp.eq.s32.totalorder %s1209_s26, 0 }
  0x34   : > { %s1591_s11 = smov (%p39_p1, %s37_s11), 0  ;;  %p1564_p8 = scmp.eq.s32.totalorder %s1288_s27, 1 }
  0x35   : > { %1563 = sst [smem:[#allocation17_spill]] %s1591_s11  ;;  %p55_p6 = por %p54_p4, %p53_p2 }
  0x36   : > { %p1348_p10 = por %p1564_p8, %p53_p2  ;;  %s41_s14 = ssub.s32 %s1205_s25, %s1591_s11 }
  0x37   : > { %p971_p12 = scmp.lt.s32.totalorder %s1209_s26, 2  ;;  %p44_p13 = scmp.eq.s32.totalorder %s41_s14, 0 }
  0x38   : > { %s1565_s10 = scalar_select %p1348_p10, 1, 0 }
  0x39   : > { %s1356_s15 = sand.u32 1, %s1197_s23   ;;  %s1546_s17 = smul.u32 384, %s1205_s25 }
  0x3a   : > { %s766_s9 = sshll.u32 %s1356_s15, 4  ;;  %p1363_p11 = pnand %p971_p12, %p55_p6 }
  0x3b   : > { %s1360_s16 = scalar_select %p44_p13, %s1197_s23, %s46_s13  }
  0x3c   : > { %s253_s18 = scalar_lea.vmem [#allocation3], %s766_s9  ;;  %s1568_s0 = sld [smem:[#allocation19_spill]] }
  0x3d   : > { %1566 = sst [smem:[#allocation18_spill]] %s1360_s16  ;;  %s268_s19 = sshll.u32 %s253_s18, 4  ;;  %s1374_s19 = int_to_ptr.vmem [resolvable:$true] %s268_s19 }
  0x3e   : > { %s250_s9 = scalar_lea.sflag [#allocation4], %s1356_s15  ;;  %p1060_p3 = pneg %p1363_p11 }
  0x42   : > { %s1372_s14 = scalar_lea.hbm %s1568_s0, %s1546_s17  ;;  %s1063_s17 = scalar_lea.hbm %s1568_s0, 768 }
  0x43   : > { %s1058_s18 = scalar_lea.hbm %s1372_s14, 256  ;;  %p1064_p9 = scmp.lt.u32.totalorder %s1372_s14, %s1568_s0 }
  0x44   : > { %p1059_p0 = scmp.ne.s32.totalorder %s1372_s14, %s1058_s18  ;;  %p1065_p1 = scmp.lt.u32.totalorder %s1063_s17, %s1058_s18 }
  0x45   : > { %p1067_p4 = scmp.lt.u32.totalorder %s1058_s18, %s1372_s14 }
  0x46   : > { %p1061_p5 = pnand %p1060_p3, %p1059_p0  ;;  %p1066_p2 = por %p1065_p1, %p1064_p9 }
  0x48   : > { %p1062_p7 = pneg %p1061_p5  ;;  %p1068_p6 = por %p1067_p4, %p1066_p2 }
  0x4a   : > { %p1069_p8 = pnand %p1068_p6, %p1062_p7 }
  0x4c   : > { %1072 = shalt.err (!%p1069_p8)
}
  0x4d   : > { %s1073_s13 = scalar_lea.vmem %s1374_s19, 256  ;;  %s1214_s20 = smov [#allocation3]  }
  0x4e   : > { %p1074_p12 = scmp.ne.s32.totalorder %s1374_s19, %s1073_s13  ;;  %s1078_s12 = sshll.u32 %s1214_s20, 4  ;;  %s1079_s12 = int_to_ptr.vmem [resolvable:$false] %s1078_s12 }
  0x4f   : > { %s1080_s2 = scalar_lea.vmem %s1079_s12, 512  ;;  %p1081_p5 = scmp.lt.s32.totalorder %s1374_s19, %s1079_s12 }
  0x50   : > { %p1076_p13 = pnand %p1074_p12, %p1060_p3  ;;  %p1082_p9 = scmp.lt.s32.totalorder %s1080_s2, %s1073_s13 }
  0x52   : > { %p1077_p0 = pneg %p1076_p13  ;;  %p1083_p1 = por %p1082_p9, %p1081_p5 }
  0x54   : > { %p1084_p2 = pnand %p1083_p1, %p1077_p0 }
  0x56   : > { %1087 = shalt.err (!%p1084_p2)
}
  0x57   : > { %s1569_s28 = smov 8   ;;  %s1570_s17 = smov 128  }
  0x58   : > { %962 = dma.hbm_to_vmem [thread:$0]  (!%p1363_p11), %s1372_s14, 256, %s1374_s19, %s250_s9, %s1570_s17, %s1570_s17, %s1569_s28  }
  0x59   : > { %s768_s18 = sshll.u32 %s1356_s15, 3  ;;  %s1571_s20 = smul.u32 384, %s1205_s25 }
  0x5a   : > { %s282_s11 = scalar_lea.vmem [#allocation6], %s768_s18  ;;  %s1572_s23 = sand.u32 1, %s1209_s26  }
  0x5b   : > { %s683_s2 = scalar_lea.hbm %s1536_s1, %s1571_s20  ;;  %s293_s16 = sshll.u32 %s282_s11, 4  ;;  %s294_s16 = int_to_ptr.vmem [resolvable:$true] %s293_s16 }
  0x5c   : > { %s1414_s0 = scalar_lea.hbm %s683_s2, 256  ;;  %s279_s30 = scalar_lea.sflag [#allocation7], %s1572_s23 }
  0x5d   : > { %s1118_s21 = scalar_lea.hbm %s683_s2, 384  ;;  %s1093_s14 = scalar_lea.hbm %s1536_s1, 768 }
  0x5e   : > { %p1089_p7 = scmp.ne.s32.totalorder %s1414_s0, %s1118_s21  ;;  %p1094_p8 = scmp.lt.u32.totalorder %s1414_s0, %s1536_s1 }
  0x5f   : > { %p1095_p12 = scmp.lt.u32.totalorder %s1093_s14, %s1118_s21  ;;  %p1097_p0 = scmp.lt.u32.totalorder %s1118_s21, %s1414_s0 }
  0x60   : > { %p1091_p4 = pnand %p1089_p7, %p1060_p3 }
  0x61   : > { %p1096_p13 = por %p1095_p12, %p1094_p8 }
  0x62   : > { %p1092_p6 = pneg %p1091_p4 }
  0x63   : > { %p1098_p5 = por %p1097_p0, %p1096_p13 }
  0x65   : > { %p1099_p9 = pnand %p1098_p5, %p1092_p6 }
  0x67   : > { %1102 = shalt.err (!%p1099_p9)
}
  0x68   : > { %s1103_s23 = scalar_lea.vmem %s294_s16, 128  ;;  %s1215_s11 = smov [#allocation6]  }
  0x69   : > { %p1104_p1 = scmp.ne.s32.totalorder %s294_s16, %s1103_s23  ;;  %s1108_s17 = sshll.u32 %s1215_s11, 4  ;;  %s1109_s17 = int_to_ptr.vmem [resolvable:$false] %s1108_s17 }
  0x6a   : > { %s1110_s18 = scalar_lea.vmem %s1109_s17, 256  ;;  %p1111_p4 = scmp.lt.s32.totalorder %s294_s16, %s1109_s17 }
  0x6b   : > { %p1106_p2 = pnand %p1104_p1, %p1060_p3  ;;  %p1112_p10 = scmp.lt.s32.totalorder %s1110_s18, %s1103_s23 }
  0x6d   : > { %p1107_p7 = pneg %p1106_p2  ;;  %p1113_p8 = por %p1112_p10, %p1111_p4 }
  0x6f   : > { %p1114_p12 = pnand %p1113_p8, %p1107_p7 }
  0x71   : > { %1117 = shalt.err (!%p1114_p12)
}
  0x72   : > { %965 = dma.hbm_to_vmem [thread:$0]  (!%p1363_p11), %s1414_s0, 128, %s294_s16, %s279_s30  }
  0x73   : > { %p1573_p6 = scmp.ne.s32.totalorder %s1560_s7, 0 }
  0x74   : > { %s1439_s21 = sand.u32 (!%p1573_p6), 1, %s1193_s22   ;;  %p1574_p10 = scmp.ne.s32.totalorder (!%p1573_p6), %s1557_s29, 0 }
  0x75   : > { %302 = sbr.rel (%p1573_p6) target bundleno = 414 (0x19e), region = 44  ;;  %s771_s20 = sshll.u32 (!%p1573_p6), %s1439_s21, 4 }
  0x76   : > { %s305_s13 = scalar_lea.sflag (!%p1573_p6), [#allocation4], %s1439_s21  ;;  %s1445_s12 = scalar_lea.vmem (!%p1573_p6), [#allocation3], %s771_s20 }
  0x7c   : > { %1172 = dma.done.wait (%p1574_p10), %s305_s13, 256  }
  0x7d   : > { %1174 = vsyncadd (%p1574_p10), %s305_s13, 4294967040  ;;  %s313_s0 = sand.u32 1, %s1288_s27   ;;  %s772_s30 = sshll.u32 %s1439_s21, 3 }
  0x7e   : > { %s314_s7 = scalar_lea.sflag [#allocation7], %s313_s0  ;;  %s1453_s16 = scalar_lea.vmem [#allocation6], %s772_s30 }
  0x7f   : > { %1176 = dma.done.wait (%p1574_p10), %s314_s7, 128  }
  0x80   : > { %1178 = vsyncadd (%p1574_p10), %s314_s7, 4294967168  ;;  %p1575_p11 = scmp.eq.s32.totalorder %s1288_s27, 0 }
  0x82   : > { %1180 = dma.done.wait (%p1575_p11), [#allocation7], 2048   ;;  %p1576_p3 = pmov %p1575_p11 }
  0x83   : > { %v1216_v0 = vmov 0.0|0.0   ;;  %vm1217_vm0 = vmmov 0   ;;  %v1218_v1 = vmov 0.0   ;;  %v366_v2 = vld [vmem:[#allocation8] sm:$0xff]  ;;  %v367_v3 = vld [vmem:[#allocation8 + $0x8] sm:$0xff]  ;;  %v368_v4 = vld [vmem:[#allocation8 + $0x10] sm:$0xff]  ;;  %v384_v29 = vlaneseq }
  0x84   : > { %1182 = vsyncadd (%p1576_p3), [#allocation7], 4294965248  ;;  %920 = vmatprep.subr.bf16.mxu1 %v1216_v0  ;;  %885 = vmatprep.mubr.msk.f32.mxu1 %vm1217_vm0, %v1218_v1  ;;  %v888_v5 = vpack.c.bf16 %v367_v3, %v366_v2  ;;  %v369_v6 = vld [vmem:[#allocation8 + $0x18] sm:$0xff]  ;;  %v370_v8 = vld [vmem:[#allocation8 + $0x20] sm:$0xff]  ;;  %s782_s14 = sshll.u32 %s1201_s24, 8  ;;  %s354_s9 = scalar_lea.vmem [#allocation9], %s771_s20 }
  0x85   : > { %v892_v7 = vpack.c.bf16 %v369_v6, %v368_v4  ;;  %v371_v9 = vld [vmem:[#allocation8 + $0x28] sm:$0xff]  ;;  %v364_v11 = vld [vmem:[%s1445_s12] sm:$0xff]  ;;  %v373_v13 = vld [vmem:[#allocation8 + $0x38] sm:$0xff]  ;;  %v385_v30 = vshrl.u32 %v384_v29, 7  ;;  %s638_s28 = sshll.u32 %s354_s9, 4  ;;  %s1484_s17 = scalar_lea.hbm %s1541_s6, %s782_s14  ;;  %s1486_s28 = int_to_ptr.vmem [resolvable:$true] %s638_s28 }
  0x86   : > { %889 = vmatprep.subr.bf16.mxu0 %v888_v5  ;;  %922 = vmatpush3.bf16.msra.mxu1 %v888_v5  ;;  %v896_v10 = vpack.c.bf16 %v371_v9, %v370_v8  ;;  %v372_v12 = vld [vmem:[#allocation8 + $0x30] sm:$0xff]  ;;  %v374_v15 = vld [vmem:[#allocation8 + $0x40] sm:$0xff]  ;;  %v375_v16 = vld [vmem:[#allocation8 + $0x48] sm:$0xff]  ;;  %s623_s24 = scalar_lea.sflag [#allocation5], %s1439_s21  ;;  %s1119_s18 = scalar_lea.vmem %s1486_s28, 256 }
  0x87   : > { %891 = vmatpush3.bf16.msra.mxu0 %v888_v5  ;;  %923 = vmatprep.subr.bf16.mxu1 %v1216_v0  ;;  %v900_v14 = vpack.c.bf16 %v373_v13, %v372_v12  ;;  %v904_v17 = vpack.c.bf16 %v375_v16, %v374_v15  ;;  %v376_v18 = vld [vmem:[#allocation8 + $0x50] sm:$0xff]  ;;  %v377_v19 = vld [vmem:[#allocation8 + $0x58] sm:$0xff]  ;;  %v378_v21 = vld [vmem:[#allocation8 + $0x60] sm:$0xff]  ;;  %v392_v31 = vadd.s32 16, %v385_v30  ;;  %vm393_vm2 = vcmp.ge.s32.totalorder %v385_v30, 2  ;;  %p1120_p13 = scmp.ne.s32.totalorder %s1486_s28, %s1119_s18  ;;  %p1577_p0 = scmp.ne.s32.totalorder %s1565_s10, 0 }
  0x88   : > { %893 = vmatprep.subr.bf16.mxu0 %v892_v7  ;;  %850 = vmatprep.mubr.f32.mxu0 %v364_v11  ;;  %v908_v20 = vpack.c.bf16 %v377_v19, %v376_v18  ;;  %v379_v22 = vld [vmem:[#allocation8 + $0x68] sm:$0xff]  ;;  %v380_v24 = vld [vmem:[#allocation8 + $0x70] sm:$0xff]  ;;  %v381_v25 = vld [vmem:[#allocation8 + $0x78] sm:$0xff]  ;;  %v399_v34 = vsel %vm393_vm2, 1.0, %v1218_v1  ;;  %v574_v38 = vsub.s32 0, %v385_v30  ;;  %v584_v47 = vsub.s32 1, %v385_v30 }
  0x89   : > { %v912_v23 = vpack.c.bf16 %v379_v22, %v378_v21  ;;  %v916_v26 = vpack.c.bf16 %v381_v25, %v380_v24  ;;  %v382_v27 = vld [vmem:[%s1453_s16] sm:$0xff]  ;;  %v365_v28 = vld [vmem:[%s1445_s12 + $0x8] sm:$0xff]  ;;  %vm485_vm1 = vcmp.lt.s32.totalorder %v392_v31, 18  ;;  %v594_v48 = vsub.s32 2, %v385_v30  ;;  %p1121_p5 = pnand %p1120_p13, %p1577_p0  ;;  %s1219_s20 = smov [#allocation9]  }
  0x8a   : > { %925 = vmatpush3.bf16.msra.mxu1 %v892_v7  ;;  %v775_v32 = vld [vmem:[%s1538_s3] ss:$0 sm:$0xff]  ;;  %v487_v33 = vsel %vm485_vm1, 1.0, %v1218_v1  ;;  %v604_v51 = vsub.s32 3, %v385_v30  ;;  %v614_v55 = vsub.s32 4, %v385_v30  ;;  %s1123_s13 = sshll.u32 %s1219_s20, 4  ;;  %s1124_s13 = int_to_ptr.vmem [resolvable:$false] %s1123_s13 }
  0x8b   : > { %895 = vmatpush3.bf16.msra.mxu0 %v892_v7  ;;  %926 = vmatprep.subr.bf16.mxu1 %v1216_v0  ;;  %v488_v35 = vmul.f32 %v775_v32, %v487_v33  ;;  %v407_v36 = vmul.f32 %v775_v32, %v399_v34  ;;  %v562_v42 = vld [vmem:[%s1539_s4] sm:$0x1f]  ;;  %p1122_p9 = pneg %p1121_p5  ;;  %s1125_s12 = scalar_lea.vmem %s1124_s13, 512 }
  0x8c   : > { %897 = vmatprep.subr.bf16.mxu0 %v896_v10  ;;  %v575_v46 = vrot.slane %v562_v42, %v574_v38  ;;  %v585_v50 = vrot.slane %v562_v42, %v584_v47  ;;  %v776_v52 = vld [vmem:[%s1540_s5] ss:$0 sm:$0xff]  ;;  %v595_v54 = vrot.slane %v562_v42, %v594_v48  ;;  %v605_v62 = vrot.slane %v562_v42, %v604_v51  ;;  %p1126_p1 = scmp.lt.s32.totalorder %s1486_s28, %s1124_s13  ;;  %p1127_p2 = scmp.lt.s32.totalorder %s1125_s12, %s1119_s18 }
  0x8d   : > { %v615_v5 = vrot.slane %v562_v42, %v614_v55 }
  0x8e   : > { %928 = vmatpush3.bf16.msra.mxu1 %v896_v10  ;;  %p1128_p7 = por %p1127_p2, %p1126_p1 }
  0x8f   : > { %899 = vmatpush3.bf16.msra.mxu0 %v896_v10  ;;  %929 = vmatprep.subr.bf16.mxu1 %v1216_v0 }
  0x90   : > { %901 = vmatprep.subr.bf16.mxu0 %v900_v14  ;;  %p1129_p4 = pnand %p1128_p7, %p1122_p9 }
  0x92   : > { %931 = vmatpush3.bf16.msra.mxu1 %v900_v14 }
  0x93   : > { %903 = vmatpush3.bf16.msra.mxu0 %v900_v14  ;;  %932 = vmatprep.subr.bf16.mxu1 %v1216_v0 }
  0x94   : > { %905 = vmatprep.subr.bf16.mxu0 %v904_v17 }
  0x96   : > { %934 = vmatpush3.bf16.msra.mxu1 %v904_v17 }
  0x97   : > { %907 = vmatpush3.bf16.msra.mxu0 %v904_v17  ;;  %935 = vmatprep.subr.bf16.mxu1 %v1216_v0 }
  0x98   : > { %909 = vmatprep.subr.bf16.mxu0 %v908_v20 }
  0x9a   : > { %937 = vmatpush3.bf16.msra.mxu1 %v908_v20 }
  0x9b   : > { %911 = vmatpush3.bf16.msra.mxu0 %v908_v20  ;;  %938 = vmatprep.subr.bf16.mxu1 %v1216_v0 }
  0x9c   : > { %913 = vmatprep.subr.bf16.mxu0 %v912_v23 }
  0x9e   : > { %940 = vmatpush3.bf16.msra.mxu1 %v912_v23 }
  0x9f   : > { %915 = vmatpush3.bf16.msra.mxu0 %v912_v23  ;;  %941 = vmatprep.subr.bf16.mxu1 %v1216_v0 }
  0xa0   : > { %917 = vmatprep.subr.bf16.mxu0 %v916_v26 }
  0xa2   : > { %943 = vmatpush3.bf16.msra.mxu1 %v916_v26 }
  0xa3   : > { %919 = vmatpush3.bf16.msra.mxu0 %v916_v26 }
  0xa5   : > { %886 = vmatmul.mubr.f32.vlgmr.msra.gmra.mrb[0].mxu1 %v382_v27 }
  0xa6   : > { %851 = vmatmul.mubr.f32.vlgmr.msra.gmra.mrb[0].mxu0 %v365_v28 }
 0x178   : > { %v555_v37 = vpop.f32.mrb[0].mxu1 }
 0x179   : > { %v852_v39 = vpop.f32.mrb[0].mxu0  ;;  %v556_v40 = vadd.f32 %v555_v37, %v488_v35  ;;  %v887_v41 = vpop.f32.mrb[1].mxu1 }
 0x17a   : > { %v481_v43 = vadd.f32 %v852_v39, %v775_v32  ;;  %v475_v44 = vpop.f32.mrb[1].mxu0 }
 0x17b   : > { %561 = vst [vmem:[#allocation2 + $0x10] sm:$0xff] %v556_v40  ;;  %v476_v45 = vadd.f32 %v475_v44, %v407_v36 }
 0x17c   : > { %560 = vst [vmem:[#allocation2 + $0x8] sm:$0xff] %v481_v43  ;;  %v577_v49 = vmul.f32 %v575_v46, %v481_v43 }
 0x17d   : > { %559 = vst [vmem:[#allocation2] sm:$0xff] %v476_v45  ;;  %v576_v53 = vmul.f32 %v575_v46, %v476_v45 }
 0x17e   : > { %v579_v58 = vadd.f32 %v776_v52, %v577_v49 }
 0x17f   : > { %v578_v63 = vadd.f32 %v776_v52, %v576_v53 }
 0x183   : > { %v581_v56 = vld [vmem:[#allocation2 + $0x9] sm:$0xff] }
 0x184   : > { %v591_v57 = vld [vmem:[#allocation2 + $0xa] sm:$0xff]  ;;  %v580_v59 = vld [vmem:[#allocation2 + $0x1] sm:$0xff]  ;;  %v587_v60 = vmul.f32 %v585_v50, %v581_v56 }
 0x185   : > { %v590_v61 = vld [vmem:[#allocation2 + $0x2] sm:$0xff]  ;;  %v586_v0 = vmul.f32 %v585_v50, %v580_v59  ;;  %v601_v1 = vld [vmem:[#allocation2 + $0xb] sm:$0xff]  ;;  %v597_v3 = vmul.f32 %v595_v54, %v591_v57 }
 0x186   : > { %v589_v2 = vadd.f32 %v587_v60, %v579_v58  ;;  %v600_v4 = vld [vmem:[#allocation2 + $0x3] sm:$0xff]  ;;  %v596_v7 = vmul.f32 %v595_v54, %v590_v61  ;;  %v611_v8 = vld [vmem:[#allocation2 + $0xc] sm:$0xff]  ;;  %v607_v10 = vmul.f32 %v605_v62, %v601_v1 }
 0x187   : > { %v588_v6 = vadd.f32 %v586_v0, %v578_v63  ;;  %v610_v11 = vld [vmem:[#allocation2 + $0x4] sm:$0xff]  ;;  %v606_v13 = vmul.f32 %v605_v62, %v600_v4  ;;  %v617_v15 = vmul.f32 %v615_v5, %v611_v8 }
 0x188   : > { %v599_v9 = vadd.f32 %v597_v3, %v589_v2  ;;  %v616_v17 = vmul.f32 %v615_v5, %v610_v11 }
 0x189   : > { %v598_v12 = vadd.f32 %v596_v7, %v588_v6 }
 0x18a   : > { %v609_v14 = vadd.f32 %v607_v10, %v599_v9 }
 0x18b   : > { %v608_v16 = vadd.f32 %v606_v13, %v598_v12 }
 0x18c   : > { %v619_v18 = vadd.f32 %v617_v15, %v609_v14 }
 0x18d   : > { %v618_v19 = vadd.f32 %v616_v17, %v608_v16 }
 0x18e   : > { %621 = vst [vmem:[%s354_s9 + $0x8] sm:$0xff] %v619_v18 }
 0x18f   : > { %620 = vst [vmem:[%s354_s9] sm:$0xff] %v618_v19 }
 0x190   : > { %1132 = shalt.err (!%p1129_p4)
}
 0x191   : > { %s1133_s0 = scalar_lea.hbm %s1484_s17, 256  ;;  %s1137_s16 = scalar_lea.hbm %s1541_s6, 512 }
 0x192   : > { %p1134_p8 = scmp.ne.s32.totalorder %s1484_s17, %s1133_s0  ;;  %p1138_p10 = scmp.lt.u32.totalorder %s1484_s17, %s1541_s6 }
 0x193   : > { %p1139_p11 = scmp.lt.u32.totalorder %s1137_s16, %s1133_s0  ;;  %p1141_p13 = scmp.lt.u32.totalorder %s1133_s0, %s1484_s17 }
 0x194   : > { %p1135_p12 = pnand %p1134_p8, %p1577_p0 }
 0x195   : > { %p1140_p3 = por %p1139_p11, %p1138_p10 }
 0x196   : > { %p1136_p6 = pneg %p1135_p12 }
 0x197   : > { %p1142_p5 = por %p1141_p13, %p1140_p3 }
 0x199   : > { %p1143_p9 = pnand %p1142_p5, %p1136_p6 }
 0x19b   : > { %1146 = shalt.err (!%p1143_p9)
}
 0x19c   : > { %s1220_s8 = smov 128   ;;  %s1221_s2 = smov 8  }
 0x19d   : > { %953 = dma.vmem_to_hbm [thread:$0]  (%p1577_p0), %s1486_s28, 256, %s1484_s17, %s623_s24, %s1220_s8, %s1220_s8, %s1221_s2  }
 0x19e PF: > { %s1578_s15 = sld [smem:[#allocation14_spill]]  ;;  %s1579_s19 = sld [smem:[#allocation16_spill]] }
 0x19f   : > { %p1581_p2 = scmp.ge.s32.totalorder %s1209_s26, 2 }
 0x1a4   : > { %s653_s14 = sand.u32 1, %s1578_s15   ;;  %p1580_p1 = scmp.ne.s32.totalorder %s1579_s19, 0 }
 0x1a5   : > { %s654_s9 = scalar_lea.sflag [#allocation5], %s653_s14 }
 0x1a6   : > { %p967_p7 = pnand %p1581_p2, %p1580_p1 }
 0x1a8   : > { %1184 = dma.done.wait (!%p967_p7), %s654_s9, 256  }
 0x1a9   : > { %1186 = vsyncadd (!%p967_p7), %s654_s9, 4294967040  ;;  %s25_s26 = sadd.s32 1, %s1209_s26   ;;  %s1582_s23 = sld [smem:[#allocation15_spill]] }
 0x1aa   : > { %p22_p4 = scmp.ge.s32.totalorder %s25_s26, 4   ;;  %s1583_s11 = sld [smem:[#allocation18_spill]] }
 0x1ab   : > { %s1584_s10 = sld [smem:[#allocation17_spill]]  ;;  %s1585_s21 = smov %s1193_s22 }
 0x1ac   : > { %s1588_s24 = smov %s1205_s25  ;;  %24 = sbr.rel (!%p22_p4) target bundleno = 11 (0xb), region = 106 }
 0x1af   : > { %s1586_s22 = smov %s1582_s23 }
 0x1b0   : > { %s1587_s23 = smov %s1583_s11 }
 0x1b1   : > { %s1589_s25 = smov %s1584_s10 }
 0x1b3   :  { %659 = vsyncpa [#allocation4], 1 }
 0x1b4   :  { %661 = vsyncpa [#allocation4 + $0x1], 1 }
 0x1b5   :  { %662 = vsyncpa [#allocation7], 1 }
 0x1b6   :  { %664 = vsyncpa [#allocation7 + $0x1], 1 }
 0x1b7   :  { %665 = vsyncpa [#allocation5], 1 }
 0x1b8   :  { %667 = vsyncpa [#allocation5 + $0x1], 1 }

</bundles_post_ra>
